<compile_context>
chip_gen: v6e
topology: v6e:2x2x1
jax: 0.10.0
libtpu: 0.0.40
codegen_flags: <defaults>
</compile_context>

<pallas_src>
import functools
import math

import jax
import jax.numpy as jnp
import numpy as np
from jax.experimental import pallas as pl
from jax.experimental.pallas import tpu as pltpu


def _plan_tiles(T, V, *, max_q=256, t_tile=None):
    """Choose (t_tile, v_pad): t_tile | T and (t_tile * v_pad) % 128 == 0.

    Small Q = t_tile*v_pad keeps the block-diagonal I(x)A_k matmul's wasted
    MXU-FLOP factor (t_tile) low: MXU work scales as Q^2, useful work as Q*V.
    Q is capped at max_q (use 128 on v5e, 256 on v6e/v7x).  V is zero-padded
    when no divisor of T gives a 128-aligned tile (e.g. V=25 skeleton graphs).
    """
    if t_tile is not None:
        assert T % t_tile == 0, "t_tile must divide T"
        m = 128 // math.gcd(t_tile, 128)
        v_pad = -(-V // m) * m
        return t_tile, v_pad
    best = None
    for d in range(1, T + 1):
        if T % d:
            continue
        m = 128 // math.gcd(d, 128)
        v_pad = -(-V // m) * m
        q = d * v_pad
        if q > max_q:
            continue
        key = (v_pad, -q)          # least V padding first, then biggest tile
        if best is None or key < best[0]:
            best = (key, (d, v_pad))
    if best is not None:
        return best[1]
    # No divisor of T fits under max_q: t_tile=1, V padded to a 128 multiple.
    return 1, -(-V // 128) * 128


def _vmem_limit_bytes(per_block_bytes):
    """Scoped-VMEM limit from the per-block footprint, capped below physical
    VMEM (64 MiB v7x, 128 MiB v5e/v6e)."""
    try:
        cap = int(pltpu.get_tpu_info().vmem_capacity_bytes)
    except Exception:
        cap = 64 * 1024 * 1024        # v7x-safe assumption
    want = int(per_block_bytes * 1.5) + (4 << 20)
    return int(max(32 << 20, min(want, int(cap * 0.8))))


def _fused_conv_graph_kernel(x_ref, w3_ref, a_ref, bias_ref, z_ref, stat_ref,
                             *, num_graphs, conv_first):
    """Fused 1x1-conv + graph contraction + BN partial-stats for one
    (sample, T-tile) block.

      x_ref   : (Cin, Q)         Q = Ttile*V_pad, lanes = merged (t, v)
      w3_ref  : (K, Cout, Cin)   per-graph conv weight
      a_ref   : (K, Q, Q)        a_ref[k] = I_Ttile (x) A_k  (block diagonal)
      bias_ref: (Cout, Q)        conv bias pushed through the graph mix (f32)
      z_ref   : (Cout, Q)        output block (lane-dense store)
      stat_ref: (Cout, 2)        [:,0]=partial sum, [:,1]=partial sum of sq.
    """
    mm_dtype = x_ref.dtype
    z = bias_ref[...].astype(jnp.float32)                    # (Cout, Q)
    for k in range(num_graphs):                              # K small, static
        if conv_first:   # Cout < Cin: keep the Q^2 term on the smaller side
            wx = jnp.dot(w3_ref[k], x_ref[...],
                         preferred_element_type=jnp.float32)
            z = z + jnp.dot(wx.astype(mm_dtype), a_ref[k],
                            preferred_element_type=jnp.float32)
        else:
            xa = jnp.dot(x_ref[...], a_ref[k],
                         preferred_element_type=jnp.float32)
            z = z + jnp.dot(w3_ref[k], xa.astype(mm_dtype),
                            preferred_element_type=jnp.float32)
    z_ref[...] = z.astype(z_ref.dtype)
    # BN pass-1 epilogue from the f32 accumulator (before any down-cast).
    stat_ref[:, 0:1] = jnp.sum(z, axis=1, keepdims=True)
    stat_ref[:, 1:2] = jnp.sum(z * z, axis=1, keepdims=True)


def _bn_res_relu_kernel(*refs, residual):
    """Tiled BatchNorm apply (+ residual) + ReLU.  All blocks lane-dense."""
    if residual:
        z_ref, x_ref, scale_ref, shift_ref, o_ref = refs
    else:
        z_ref, scale_ref, shift_ref, o_ref = refs
    out = z_ref[...].astype(jnp.float32) * scale_ref[...] + shift_ref[...]
    if residual:
        out = out + x_ref[...].astype(jnp.float32)
    o_ref[...] = jnp.maximum(out, 0.0).astype(o_ref.dtype)


def graph_conv_forward(x, A, W, b, gamma, beta, *, residual=True, eps=1e-5,
                       matmul_dtype=jnp.float32, z_dtype=None, t_tile=None,
                       max_q=256):
    """Equivalent of GraphConv.forward(x, A) (training-mode BN). Returns (out, A).

    matmul_dtype=jnp.bfloat16 runs the MXU matmuls with bf16 inputs and f32
    accumulation (recommended on v5e/v6e/v7x; the MXU is bf16-native on all of
    them) and stores the z intermediate in bf16, halving the epilogue's HBM
    traffic.  Statistics and the BN apply always stay f32.
    max_q: lane width of a block; use 128 on v5e, 256 (default) on v6e/v7x.
    """
    N, Cin, T, V = x.shape
    K = A.shape[0]
    KC = W.shape[0]
    Cout = KC // K
    assert A.shape == (K, V, V)
    assert KC == K * Cout
    if residual:
        assert Cin == Cout, "residual path requires in_channels == out_channels"

    f32 = jnp.float32
    if z_dtype is None:
        z_dtype = matmul_dtype

    tt, v_pad = _plan_tiles(T, V, max_q=max_q, t_tile=t_tile)
    n_tt = T // tt
    Q = tt * v_pad
    TVp = T * v_pad

    # Zero-pad V so the merged (t, v) lane axis is 128-aligned.  Padded A
    # rows/cols are zero, so padded z lanes are exactly 0 and BN stats
    # (divided by the true count) are unaffected.
    if v_pad != V:
        x_p = jnp.pad(x, ((0, 0), (0, 0), (0, 0), (0, v_pad - V)))
        A_p = jnp.pad(A, ((0, 0), (0, v_pad - V), (0, v_pad - V)))
    else:
        x_p, A_p = x, A

    # ---- tiny parameter-side precompute (plain JAX glue, O(params)) -------
    w3 = W.reshape(K, Cout, Cin).astype(matmul_dtype)        # per-graph weight
    # Block-diagonal I_Ttile (x) A_k: graph mix acts on merged (t, v) lanes
    # with zero in-kernel relayout.
    a_kron = jnp.einsum('tu,kvw->ktvuw', jnp.eye(tt, dtype=f32),
                        A_p.astype(f32)).reshape(K, Q, Q).astype(matmul_dtype)
    # Conv bias pushed through the (linear) graph mix:
    #   bias_eff[c, w] = sum_k b[k*Cout+c] * sum_v A[k, v, w]
    bias_eff = jnp.einsum('kc,kw->cw', b.astype(f32).reshape(K, Cout),
                          jnp.sum(A_p.astype(f32), axis=1))
    bias_tile = jnp.tile(bias_eff, (1, tt))                  # (Cout, Q), f32

    x2 = x_p.reshape(N, Cin, TVp)                            # free reshape
    x_mm = x2.astype(matmul_dtype)

    conv_first = Cout < Cin

    # ---- VMEM budget from the actual per-block footprint -------------------
    bmm = np.dtype(matmul_dtype).itemsize
    bz = np.dtype(z_dtype).itemsize
    bx = np.dtype(x.dtype).itemsize
    k1_bytes = (2 * Cin * Q * bmm                    # streamed x (2 buffers)
                + 2 * Cout * Q * bz                  # z output
                + 2 * Cout * 2 * 4                   # packed stats output
                + 2 * (K * Cout * Cin * bmm          # resident weights
                       + K * Q * Q * bmm + Cout * Q * 4))
    k2_bytes = (2 * Cout * Q * bz + 2 * Cout * Q * bx
                + (2 * Cin * Q * bx if residual else 0) + 4 * Cout * 4)
    cparams = pltpu.CompilerParams(
        dimension_semantics=("parallel", "parallel"),
        vmem_limit_bytes=_vmem_limit_bytes(max(k1_bytes, k2_bytes)))

    # ---- kernel 1: fused 1x1 conv + graph contraction + BN partial stats ---
    z, stats = pl.pallas_call(
        functools.partial(_fused_conv_graph_kernel, num_graphs=K,
                          conv_first=conv_first),
        out_shape=(
            jax.ShapeDtypeStruct((N, Cout, TVp), z_dtype),
            jax.ShapeDtypeStruct((N, n_tt, Cout, 2), f32),
        ),
        grid=(N, n_tt),
        in_specs=[
            pl.BlockSpec((None, Cin, Q), lambda n, t: (n, 0, t)),
            pl.BlockSpec((K, Cout, Cin), lambda n, t: (0, 0, 0)),    # resident
            pl.BlockSpec((K, Q, Q), lambda n, t: (0, 0, 0)),         # resident
            pl.BlockSpec((Cout, Q), lambda n, t: (0, 0)),            # resident
        ],
        out_specs=(
            pl.BlockSpec((None, Cout, Q), lambda n, t: (n, 0, t)),
            pl.BlockSpec((None, None, Cout, 2), lambda n, t: (n, t, 0, 0)),
        ),
        compiler_params=cparams,
    )(x_mm, w3, a_kron, bias_tile)

    # ---- BN pass 2 setup: tiny O(C) cross-block reduction in plain JAX ----
    cnt = float(N * T * V)                                   # true (unpadded)
    s = jnp.sum(stats, axis=(0, 1))                          # (Cout, 2)
    mean = s[:, 0:1] / cnt
    var = jnp.maximum(s[:, 1:2] / cnt - mean * mean, 0.0)    # biased variance
    inv = jax.lax.rsqrt(var + eps)
    scale = gamma.astype(f32).reshape(Cout, 1) * inv
    shift = beta.astype(f32).reshape(Cout, 1) - mean * scale

    # ---- kernel 2: tiled BN apply + residual + ReLU (lane-dense blocks) ----
    apply_inputs = [z] + ([x2] if residual else []) + [scale, shift]
    apply_specs = (
        [pl.BlockSpec((None, Cout, Q), lambda n, t: (n, 0, t))]
        + ([pl.BlockSpec((None, Cin, Q), lambda n, t: (n, 0, t))]
           if residual else [])
        + [pl.BlockSpec((Cout, 1), lambda n, t: (0, 0)),
           pl.BlockSpec((Cout, 1), lambda n, t: (0, 0))]
    )
    out = pl.pallas_call(
        functools.partial(_bn_res_relu_kernel, residual=residual),
        out_shape=jax.ShapeDtypeStruct((N, Cout, TVp), x.dtype),
        grid=(N, n_tt),
        in_specs=apply_specs,
        out_specs=pl.BlockSpec((None, Cout, Q), lambda n, t: (n, 0, t)),
        compiler_params=cparams,
    )(*apply_inputs)

    out = out.reshape(N, Cout, T, v_pad)
    if v_pad != V:
        out = out[..., :V]
    return out, A


def _reference(x, A, W, b, gamma, beta, *, residual=True, eps=1e-5):
    N, Cin, T, V = x.shape
    K = A.shape[0]
    Cout = W.shape[0] // K
    y = jnp.einsum('oc,nctv->notv', W, x) + b[None, :, None, None]
    y = y.reshape(N, K, Cout, T, V)
    z = jnp.einsum('nkctv,kvw->nctw', y, A)
    mean = jnp.mean(z, axis=(0, 2, 3), keepdims=True)
    var = jnp.mean((z - mean) ** 2, axis=(0, 2, 3), keepdims=True)
    zn = (z - mean) * jax.lax.rsqrt(var + eps)
    out = zn * gamma.reshape(1, Cout, 1, 1) + beta.reshape(1, Cout, 1, 1)
    if residual:
        out = out + x
    return jnp.maximum(out, 0.0)


if __name__ == "__main__":
    key = jax.random.PRNGKey(0)
    N, Cin, T, V = 2, 4, 16, 16
    K = 3                       # num_graphs
    Cout = 4                    # == Cin so the residual branch is valid
    k1, k2, k3, k4, k5, k6 = jax.random.split(key, 6)

    x = jax.random.normal(k1, (N, Cin, T, V), jnp.float32)
    A = jax.random.normal(k2, (K, V, V), jnp.float32) * 0.1
    W = jax.random.normal(k3, (K * Cout, Cin), jnp.float32) * 0.2   # conv weight
    b = jax.random.normal(k4, (K * Cout,), jnp.float32) * 0.1       # conv bias
    gamma = 1.0 + 0.5 * jax.random.normal(k5, (Cout,), jnp.float32)  # BN weight
    beta = 0.1 * jax.random.normal(k6, (Cout,), jnp.float32)         # BN bias

    ref_res = _reference(x, A, W, b, gamma, beta, residual=True)
    ref_nores = _reference(x, A, W, b, gamma, beta, residual=False)

    # 1) f32, auto tile (Q capped at 256).
    out, A_out = graph_conv_forward(x, A, W, b, gamma, beta, residual=True)
    out = jax.block_until_ready(out)
    assert out.shape == (N, Cout, T, V)
    assert jnp.allclose(out, ref_res, atol=1e-4, rtol=1e-4), \
        float(jnp.max(jnp.abs(out - ref_res)))

    # 2) f32, explicit T-tiling (Q=128, grid (N, 2)).
    out_t, _ = graph_conv_forward(x, A, W, b, gamma, beta,
                                  residual=True, t_tile=8)
    out_t = jax.block_until_ready(out_t)
    assert jnp.allclose(out_t, ref_res, atol=1e-4, rtol=1e-4), \
        float(jnp.max(jnp.abs(out_t - ref_res)))

    # 3) f32, residual disabled.
    out_nr, _ = graph_conv_forward(x, A, W, b, gamma, beta,
                                   residual=False, t_tile=8)
    out_nr = jax.block_until_ready(out_nr)
    assert jnp.allclose(out_nr, ref_nores, atol=1e-4, rtol=1e-4), \
        float(jnp.max(jnp.abs(out_nr - ref_nores)))

    # 4) bf16 MXU inputs / f32 accumulation, bf16 z intermediate.
    out_bf, _ = graph_conv_forward(x, A, W, b, gamma, beta, residual=True,
                                   matmul_dtype=jnp.bfloat16, t_tile=8)
    out_bf = jax.block_until_ready(out_bf)
    assert jnp.allclose(out_bf, ref_res, atol=2e-1, rtol=1e-1), \
        float(jnp.max(jnp.abs(out_bf - ref_res)))

    # 5) Unaligned V (skeleton-like, V=25 -> padded to 32) + Cout < Cin
    #    (exercises the conv-first dot ordering).  residual=False.
    N5, Cin5, Cout5, K5, T5, V5 = 2, 8, 4, 2, 12, 25
    j1, j2, j3, j4, j5, j6 = jax.random.split(jax.random.PRNGKey(1), 6)
    x5 = jax.random.normal(j1, (N5, Cin5, T5, V5), jnp.float32)
    A5 = jax.random.normal(j2, (K5, V5, V5), jnp.float32) * 0.1
    W5 = jax.random.normal(j3, (K5 * Cout5, Cin5), jnp.float32) * 0.2
    b5 = jax.random.normal(j4, (K5 * Cout5,), jnp.float32) * 0.1
    g5 = 1.0 + 0.5 * jax.random.normal(j5, (Cout5,), jnp.float32)
    be5 = 0.1 * jax.random.normal(j6, (Cout5,), jnp.float32)
    ref5 = _reference(x5, A5, W5, b5, g5, be5, residual=False)
    out5, _ = graph_conv_forward(x5, A5, W5, b5, g5, be5, residual=False)
    out5 = jax.block_until_ready(out5)
    assert out5.shape == (N5, Cout5, T5, V5)
    assert jnp.allclose(out5, ref5, atol=1e-4, rtol=1e-4), \
        float(jnp.max(jnp.abs(out5 - ref5)))

    print("KERNEL_OK")
</pallas_src>

<mosaic_0001>
module attributes {stable_mosaic.version = 11 : i64} {
  func.func @_fused_conv_graph_kernel(%arg0: i32, %arg1: i32, %arg2: memref<1x4x256xf32, #tpu.memory_space<vmem>>, %arg3: memref<3x4x4xf32, #tpu.memory_space<vmem>>, %arg4: memref<3x256x256xf32, #tpu.memory_space<vmem>>, %arg5: memref<4x256xf32, #tpu.memory_space<vmem>>, %arg6: memref<1x4x256xf32, #tpu.memory_space<vmem>>, %arg7: memref<1x1x4x2xf32, #tpu.memory_space<vmem>>) attributes {dimension_semantics = [#tpu.dimension_semantics<parallel>, #tpu.dimension_semantics<parallel>], iteration_bounds = array<i64: 2, 1>, scalar_prefetch = 0 : i64, scratch_operands = 0 : i64, tpu.core_type = #tpu.core_type<tc>, window_params = [{transform_indices = @transform_0, window_bounds = array<i64: 1, 4, 256>}, {pipeline_mode = #tpu.pipeline_mode<synchronous>, transform_indices = @transform_1, window_bounds = array<i64: 3, 4, 4>}, {pipeline_mode = #tpu.pipeline_mode<synchronous>, transform_indices = @transform_2, window_bounds = array<i64: 3, 256, 256>}, {pipeline_mode = #tpu.pipeline_mode<synchronous>, transform_indices = @transform_3, window_bounds = array<i64: 4, 256>}, {transform_indices = @transform_4, window_bounds = array<i64: 1, 4, 256>}, {transform_indices = @transform_5, window_bounds = array<i64: 1, 1, 4, 2>}]} {
    %c0 = arith.constant 0 : index
    %c0_0 = arith.constant 0 : index
    %0 = vector.load %arg5[%c0, %c0_0] : memref<4x256xf32, #tpu.memory_space<vmem>>, vector<4x256xf32>
    %c0_1 = arith.constant 0 : index
    %c0_2 = arith.constant 0 : index
    %c0_3 = arith.constant 0 : index
    %1 = vector.load %arg2[%c0_1, %c0_2, %c0_3] : memref<1x4x256xf32, #tpu.memory_space<vmem>>, vector<1x4x256xf32>
    %2 = vector.shape_cast %1 : vector<1x4x256xf32> to vector<4x256xf32>
    %c0_4 = arith.constant 0 : index
    %c0_5 = arith.constant 0 : index
    %c0_6 = arith.constant 0 : index
    %3 = vector.load %arg4[%c0_4, %c0_5, %c0_6] : memref<3x256x256xf32, #tpu.memory_space<vmem>>, vector<1x256x256xf32>
    %4 = vector.shape_cast %3 : vector<1x256x256xf32> to vector<256x256xf32>
    %cst = arith.constant dense<0.000000e+00> : vector<4x256xf32>
    %5 = tpu.matmul %2, %4, %cst {dimension_numbers = #tpu.dot_dimension_numbers<[1], [0], [0], [1], [0, 0, 1, 1], [], []>} : vector<4x256xf32>, vector<256x256xf32>, vector<4x256xf32> -> vector<4x256xf32>
    %c0_7 = arith.constant 0 : index
    %c0_8 = arith.constant 0 : index
    %c0_9 = arith.constant 0 : index
    %6 = vector.load %arg3[%c0_7, %c0_8, %c0_9] : memref<3x4x4xf32, #tpu.memory_space<vmem>>, vector<1x4x4xf32>
    %7 = vector.shape_cast %6 : vector<1x4x4xf32> to vector<4x4xf32>
    %cst_10 = arith.constant dense<0.000000e+00> : vector<4x256xf32>
    %8 = tpu.matmul %7, %5, %cst_10 {dimension_numbers = #tpu.dot_dimension_numbers<[1], [0], [0], [1], [0, 0, 1, 1], [], []>} : vector<4x4xf32>, vector<4x256xf32>, vector<4x256xf32> -> vector<4x256xf32>
    %9 = arith.addf %0, %8 : vector<4x256xf32>
    %c0_11 = arith.constant 0 : index
    %c0_12 = arith.constant 0 : index
    %c0_13 = arith.constant 0 : index
    %10 = vector.load %arg2[%c0_11, %c0_12, %c0_13] : memref<1x4x256xf32, #tpu.memory_space<vmem>>, vector<1x4x256xf32>
    %11 = vector.shape_cast %10 : vector<1x4x256xf32> to vector<4x256xf32>
    %c1 = arith.constant 1 : index
    %c0_14 = arith.constant 0 : index
    %c0_15 = arith.constant 0 : index
    %12 = vector.load %arg4[%c1, %c0_14, %c0_15] : memref<3x256x256xf32, #tpu.memory_space<vmem>>, vector<1x256x256xf32>
    %13 = vector.shape_cast %12 : vector<1x256x256xf32> to vector<256x256xf32>
    %cst_16 = arith.constant dense<0.000000e+00> : vector<4x256xf32>
    %14 = tpu.matmul %11, %13, %cst_16 {dimension_numbers = #tpu.dot_dimension_numbers<[1], [0], [0], [1], [0, 0, 1, 1], [], []>} : vector<4x256xf32>, vector<256x256xf32>, vector<4x256xf32> -> vector<4x256xf32>
    %c1_17 = arith.constant 1 : index
    %c0_18 = arith.constant 0 : index
    %c0_19 = arith.constant 0 : index
    %15 = vector.load %arg3[%c1_17, %c0_18, %c0_19] : memref<3x4x4xf32, #tpu.memory_space<vmem>>, vector<1x4x4xf32>
    %16 = vector.shape_cast %15 : vector<1x4x4xf32> to vector<4x4xf32>
    %cst_20 = arith.constant dense<0.000000e+00> : vector<4x256xf32>
    %17 = tpu.matmul %16, %14, %cst_20 {dimension_numbers = #tpu.dot_dimension_numbers<[1], [0], [0], [1], [0, 0, 1, 1], [], []>} : vector<4x4xf32>, vector<4x256xf32>, vector<4x256xf32> -> vector<4x256xf32>
    %18 = arith.addf %9, %17 : vector<4x256xf32>
    %c0_21 = arith.constant 0 : index
    %c0_22 = arith.constant 0 : index
    %c0_23 = arith.constant 0 : index
    %19 = vector.load %arg2[%c0_21, %c0_22, %c0_23] : memref<1x4x256xf32, #tpu.memory_space<vmem>>, vector<1x4x256xf32>
    %20 = vector.shape_cast %19 : vector<1x4x256xf32> to vector<4x256xf32>
    %c2 = arith.constant 2 : index
    %c0_24 = arith.constant 0 : index
    %c0_25 = arith.constant 0 : index
    %21 = vector.load %arg4[%c2, %c0_24, %c0_25] : memref<3x256x256xf32, #tpu.memory_space<vmem>>, vector<1x256x256xf32>
    %22 = vector.shape_cast %21 : vector<1x256x256xf32> to vector<256x256xf32>
    %cst_26 = arith.constant dense<0.000000e+00> : vector<4x256xf32>
    %23 = tpu.matmul %20, %22, %cst_26 {dimension_numbers = #tpu.dot_dimension_numbers<[1], [0], [0], [1], [0, 0, 1, 1], [], []>} : vector<4x256xf32>, vector<256x256xf32>, vector<4x256xf32> -> vector<4x256xf32>
    %c2_27 = arith.constant 2 : index
    %c0_28 = arith.constant 0 : index
    %c0_29 = arith.constant 0 : index
    %24 = vector.load %arg3[%c2_27, %c0_28, %c0_29] : memref<3x4x4xf32, #tpu.memory_space<vmem>>, vector<1x4x4xf32>
    %25 = vector.shape_cast %24 : vector<1x4x4xf32> to vector<4x4xf32>
    %cst_30 = arith.constant dense<0.000000e+00> : vector<4x256xf32>
    %26 = tpu.matmul %25, %23, %cst_30 {dimension_numbers = #tpu.dot_dimension_numbers<[1], [0], [0], [1], [0, 0, 1, 1], [], []>} : vector<4x4xf32>, vector<4x256xf32>, vector<4x256xf32> -> vector<4x256xf32>
    %27 = arith.addf %18, %26 : vector<4x256xf32>
    %c0_31 = arith.constant 0 : index
    %c0_32 = arith.constant 0 : index
    %c0_33 = arith.constant 0 : index
    %28 = vector.load %arg6[%c0_31, %c0_32, %c0_33] : memref<1x4x256xf32, #tpu.memory_space<vmem>>, vector<1x4x256xf32>
    %29 = vector.shape_cast %28 : vector<1x4x256xf32> to vector<4x256xf32>
    %30 = vector.shape_cast %27 : vector<4x256xf32> to vector<1x4x256xf32>
    tpu.vector_store %arg6[%c0_31, %c0_32, %c0_33], %30 {strides = array<i32>} : memref<1x4x256xf32, #tpu.memory_space<vmem>>, vector<1x4x256xf32>,
    %cst_34 = arith.constant dense<0.000000e+00> : vector<4xf32>
    %31 = vector.multi_reduction <add>, %27, %cst_34 [1] : vector<4x256xf32> to vector<4xf32>
    %32 = vector.shape_cast %31 : vector<4xf32> to vector<4x1xf32>
    %c0_35 = arith.constant 0 : index
    %c0_36 = arith.constant 0 : index
    %c0_37 = arith.constant 0 : index
    %c0_38 = arith.constant 0 : index
    %33 = vector.load %arg7[%c0_35, %c0_36, %c0_37, %c0_38] : memref<1x1x4x2xf32, #tpu.memory_space<vmem>>, vector<1x1x4x1xf32>
    %34 = vector.shape_cast %33 : vector<1x1x4x1xf32> to vector<4x1xf32>
    %35 = vector.shape_cast %32 : vector<4x1xf32> to vector<1x1x4x1xf32>
    tpu.vector_store %arg7[%c0_35, %c0_36, %c0_37, %c0_38], %35 {strides = array<i32>} : memref<1x1x4x2xf32, #tpu.memory_space<vmem>>, vector<1x1x4x1xf32>,
    %36 = arith.mulf %27, %27 : vector<4x256xf32>
    %cst_39 = arith.constant dense<0.000000e+00> : vector<4xf32>
    %37 = vector.multi_reduction <add>, %36, %cst_39 [1] : vector<4x256xf32> to vector<4xf32>
    %38 = vector.shape_cast %37 : vector<4xf32> to vector<4x1xf32>
    %c0_40 = arith.constant 0 : index
    %c0_41 = arith.constant 0 : index
    %c0_42 = arith.constant 0 : index
    %c1_43 = arith.constant 1 : index
    %39 = vector.load %arg7[%c0_40, %c0_41, %c0_42, %c1_43] : memref<1x1x4x2xf32, #tpu.memory_space<vmem>>, vector<1x1x4x1xf32>
    %40 = vector.shape_cast %39 : vector<1x1x4x1xf32> to vector<4x1xf32>
    %41 = vector.shape_cast %38 : vector<4x1xf32> to vector<1x1x4x1xf32>
    tpu.vector_store %arg7[%c0_40, %c0_41, %c0_42, %c1_43], %41 {strides = array<i32>} : memref<1x1x4x2xf32, #tpu.memory_space<vmem>>, vector<1x1x4x1xf32>,
    return
  }
  func.func @transform_0(%arg0: i32, %arg1: i32) -> (i32, i32, i32) {
    %c0_i32 = arith.constant 0 : i32
    %c0_i32_0 = arith.constant 0 : i32
    return %arg0, %c0_i32, %arg1 : i32, i32, i32
  }
  func.func @transform_1(%arg0: i32, %arg1: i32) -> (i32, i32, i32) {
    %c0_i32 = arith.constant 0 : i32
    %c0_i32_0 = arith.constant 0 : i32
    %c0_i32_1 = arith.constant 0 : i32
    %c0_i32_2 = arith.constant 0 : i32
    return %c0_i32, %c0_i32_0, %c0_i32_1 : i32, i32, i32
  }
  func.func @transform_2(%arg0: i32, %arg1: i32) -> (i32, i32, i32) {
    %c0_i32 = arith.constant 0 : i32
    %c0_i32_0 = arith.constant 0 : i32
    %c0_i32_1 = arith.constant 0 : i32
    %c0_i32_2 = arith.constant 0 : i32
    return %c0_i32, %c0_i32_0, %c0_i32_1 : i32, i32, i32
  }
  func.func @transform_3(%arg0: i32, %arg1: i32) -> (i32, i32) {
    %c0_i32 = arith.constant 0 : i32
    %c0_i32_0 = arith.constant 0 : i32
    %c0_i32_1 = arith.constant 0 : i32
    return %c0_i32, %c0_i32_0 : i32, i32
  }
  func.func @transform_4(%arg0: i32, %arg1: i32) -> (i32, i32, i32) {
    %c0_i32 = arith.constant 0 : i32
    %c0_i32_0 = arith.constant 0 : i32
    return %arg0, %c0_i32, %arg1 : i32, i32, i32
  }
  func.func @transform_5(%arg0: i32, %arg1: i32) -> (i32, i32, i32, i32) {
    %c0_i32 = arith.constant 0 : i32
    %c0_i32_0 = arith.constant 0 : i32
    %c0_i32_1 = arith.constant 0 : i32
    return %arg0, %arg1, %c0_i32, %c0_i32_0 : i32, i32, i32, i32
  }
}

</mosaic_0001>

<bundles_post_ra>
// kernel: tpu_custom_call.1
= control target key start
LH: loop header
LB: loop body
LE: loop exit
PB: predicated region body
PF: predicated region fallthrough
CT: control target
= control target key end

     0   :  { %s1779_s0 = inlined_call_operand.hbm [shape: f32[2,4,256], index: 0, kind: input, shape index: {}]   ;;  %s1780_s1 = inlined_call_operand.hbm [shape: f32[3,4,4], index: 1, kind: input, shape index: {}]   ;;  %s1781_s2 = inlined_call_operand.hbm [shape: f32[3,256,256], index: 2, kind: input, shape index: {}]   ;;  %s1782_s3 = inlined_call_operand.hbm [shape: f32[4,256], index: 3, kind: input, shape index: {}]   ;;  %s1783_s4 = inlined_call_operand.hbm [shape: f32[2,4,256], index: 4, kind: output, shape index: {0}]   ;;  %s1784_s5 = inlined_call_operand.vmem [shape: f32[2,1,4,2], index: 5, kind: output, shape index: {1}]  }
   0x1   :  { %1788 = sst [smem:[#allocation15_spill]] %s1780_s1 }
   0x2   :  { %1789 = sst [smem:[#allocation16_spill]] %s1781_s2 }
   0x3   :  { %11 = vsyncpa [#allocation3], 0 }
   0x4   :  { %13 = vsyncpa [#allocation3 + $0x1], 0 }
   0x5   :  { %14 = vsyncpa [#allocation6], 0 }
   0x6   :  { %15 = vsyncpa [#allocation9], 0 }
   0x7   :  { %16 = vsyncpa [#allocation4], 0 }
   0x8   :  { %18 = vsyncpa [#allocation4 + $0x1], 0  ;;  %s1557_s18 = smov 0   ;;  %s1559_s19 = smov 0  }
   0x9   :  { %s1561_s20 = smov 0   ;;  %s1563_s21 = smov 0  }
   0xa   :  { %s1565_s22 = smov 0   ;;  %s1567_s23 = smov 0  }
   0xb LB: > { %s1189_s24 = sadd.s32 4294967295, %s1515_s23   ;;  %s1190_s25 = sadd.s32 4294967294, %s1515_s23   ;;  %s1515_s23 = sphi %s1567_s23, %s24_s23   ;;  %s1511_s22 = sphi %s1565_s22, %s1809_s22   ;;  %s1507_s21 = sphi %s1563_s21, %s1808_s21   ;;  %s1503_s20 = sphi %s1561_s20, %s1807_s20   ;;  %s1499_s19 = sphi %s1559_s19, %s1806_s19   ;;  %s1495_s18 = sphi %s1557_s18, %s1805_s18  }
   0xc   : > { %p58_p0 = scmp.ne.s32.totalorder %s1499_s19, %s1495_s18  ;;  %p1591_p1 = scmp.eq.s32.totalorder %s1189_s24, 0 }
   0xd   : > { %p1595_p2 = scmp.eq.s32.totalorder %s1189_s24, 1  ;;  %p153_p3 = scmp.eq.s32.totalorder %s1190_s25, 1 }
   0xe   : > { %s1790_s26 = scalar_select %p1591_p1, 1, 0 }
   0xf   : > { %p1601_p4 = por %p1591_p1, %p58_p0  ;;  %p1191_p5 = scmp.ge.s32.totalorder %s1515_s23, 1 }
  0x10   : > { %p1606_p6 = por %p153_p3, %p58_p0  ;;  %p188_p7 = scmp.lt.s32.totalorder %s1515_s23, 3 }
  0x11   : > { %s1792_s28 = scalar_select %p1601_p4, 1, 0 }
  0x12   : > { %s1793_s29 = scalar_select %p1606_p6, 1, 0 }
  0x13   : > { %p1611_p8 = pnand %p1191_p5, %p188_p7  ;;  %s1517_s6 = smov [#allocation5]  }
  0x14   : > { %s200_s7 = sshll.u32 %s1517_s6, 4  ;;  %s1518_s9 = smov [#allocation7]   ;;  %s201_s7 = int_to_ptr.vmem [resolvable:$true] %s200_s7 }
  0x15   : > { %p1238_p9 = pneg %p1611_p8  ;;  %s213_s10 = sshll.u32 %s1518_s9, 4  ;;  %s214_s10 = int_to_ptr.vmem [resolvable:$true] %s213_s10 }
  0x16   : > { %s1332_s11 = scalar_lea.vmem %s201_s7, 192  ;;  %p1340_p5 = scmp.lt.s32.totalorder %s201_s7, %s201_s7 }
  0x17   : > { %p1620_p11 = pnand %p1238_p9, %p1591_p1  ;;  %p1333_p13 = scmp.ne.s32.totalorder %s201_s7, %s1332_s11 }
  0x18   : > { %p1341_p7 = scmp.lt.s32.totalorder %s1332_s11, %s1332_s11 }
  0x19   : > { %p1323_p12 = pneg %p1620_p11 }
  0x1a   : > { %p1342_p10 = por %p1341_p7, %p1340_p5 }
  0x1b   : > { %p1335_p0 = pnand %p1333_p13, %p1323_p12 }
  0x1d   : > { %p1336_p3 = pneg %p1335_p0 }
  0x1f   : > { %p1343_p9 = pnand %p1342_p10, %p1336_p3 }
  0x21   : > { %1346 = shalt.err (!%p1343_p9)
}
  0x22   : > { %s1519_s12 = smov 64   ;;  %s1520_s13 = smov 4  }
  0x23   : > { %s1796_s1 = sld [smem:[#allocation15_spill]]  ;;  %s1358_s16 = scalar_lea.vmem %s214_s10, 24576 }
  0x24   : > { %p1359_p6 = scmp.ne.s32.totalorder %s214_s10, %s1358_s16  ;;  %p1366_p1 = scmp.lt.s32.totalorder %s214_s10, %s214_s10 }
  0x25   : > { %p1367_p4 = scmp.lt.s32.totalorder %s1358_s16, %s1358_s16 }
  0x26   : > { %p1361_p13 = pnand %p1359_p6, %p1323_p12 }
  0x27   : > { %p1368_p5 = por %p1367_p4, %p1366_p1 }
  0x28   : > { %p1362_p0 = pneg %p1361_p13 }
  0x29   : > { %1241 = dma.hbm_to_vmem [thread:$0]  (!%p1620_p11), %s1796_s1, 192, %s201_s7, [#allocation6], %s1519_s12, %s1519_s12, %s1520_s13  }
  0x2a   : > { %p1369_p10 = pnand %p1368_p5, %p1362_p0 }
  0x2c   : > { %1372 = shalt.err (!%p1369_p10)
}
  0x2d   : > { %s1521_s17 = smov 256   ;;  %s1522_s24 = smov 16  }
  0x2e   : > { %s1797_s2 = sld [smem:[#allocation16_spill]]  ;;  %s1523_s7 = smov [#allocation8]  }
  0x2f   : > { %s227_s9 = sshll.u32 %s1523_s7, 4  ;;  %s228_s9 = int_to_ptr.vmem [resolvable:$true] %s227_s9 }
  0x30   : > { %s1384_s11 = scalar_lea.vmem %s228_s9, 128  ;;  %p1392_p4 = scmp.lt.s32.totalorder %s228_s9, %s228_s9 }
  0x31   : > { %p1385_p6 = scmp.ne.s32.totalorder %s228_s9, %s1384_s11  ;;  %p1393_p7 = scmp.lt.s32.totalorder %s1384_s11, %s1384_s11 }
  0x33   : > { %p1387_p3 = pnand %p1385_p6, %p1323_p12  ;;  %p1394_p9 = por %p1393_p7, %p1392_p4 }
  0x34   : > { %1244 = dma.hbm_to_vmem [thread:$0]  (!%p1620_p11), %s1797_s2, 24576, %s214_s10, [#allocation6], %s1521_s17, %s1521_s17, %s1522_s24  }
  0x35   : > { %p1388_p1 = pneg %p1387_p3 }
  0x37   : > { %p1395_p13 = pnand %p1394_p9, %p1388_p1 }
  0x39   : > { %1398 = shalt.err (!%p1395_p13)
}
  0x3a   : > { %1247 = dma.hbm_to_vmem [thread:$0]  (!%p1620_p11), %s1782_s3, 128, %s228_s9, [#allocation9]  }
  0x3b   : > { %s36_s10 = sadd.s32 1, %s1511_s22  ;;  %s45_s14 = sadd.s32 1, %s1503_s20 }
  0x3c   : > { %p38_p12 = scmp.ge.s32.totalorder %s36_s10, 2  ;;  %p52_p0 = scmp.ne.s32.totalorder %s1503_s20, %s1499_s19 }
  0x3d   : > { %p53_p5 = scmp.eq.s32.totalorder %s1515_s23, 0  ;;  %p1259_p11 = scmp.lt.s32.totalorder %s1515_s23, 2 }
  0x3e   : > { %s1811_s10 = smov (%p38_p12, %s36_s10), 0  ;;  %p1663_p6 = por %p1595_p2, %p52_p0 }
  0x3f   : > { %p1657_p10 = por %p53_p5, %p52_p0  ;;  %s40_s16 = ssub.s32 %s1511_s22, %s1811_s10 }
  0x40   : > { %p43_p3 = scmp.eq.s32.totalorder %s40_s16, 0  ;;  %s238_s17 = sand.u32 1, %s1503_s20  }
  0x41   : > { %s1196_s24 = sshll.u32 %s238_s17, 3  ;;  %s1220_s6 = sshll.u32 %s1511_s22, 7 }
  0x42   : > { %s1672_s25 = scalar_select %p43_p3, %s1503_s20, %s45_s14  }
  0x43   : > { %s250_s11 = scalar_lea.hbm %s1779_s0, %s1220_s6  ;;  %s242_s12 = scalar_lea.vmem [#allocation2], %s1196_s24 }
  0x44   : > { %s252_s13 = sshll.u32 %s242_s12, 4  ;;  %p1680_p2 = pnand %p1259_p11, %p1657_p10  ;;  %s253_s13 = int_to_ptr.vmem [resolvable:$true] %s252_s13 }
  0x45   : > { %s239_s1 = scalar_lea.sflag [#allocation3], %s238_s17  ;;  %s1412_s16 = scalar_lea.vmem %s253_s13, 128 }
  0x46   : > { %p1401_p1 = pneg %p1680_p2  ;;  %p1413_p4 = scmp.ne.s32.totalorder %s253_s13, %s1412_s16 }
  0x47   : > { %s1524_s14 = smov [#allocation2]  }
  0x48   : > { %p1415_p7 = pnand %p1413_p4, %p1401_p1  ;;  %s1417_s2 = sshll.u32 %s1524_s14, 4  ;;  %s1418_s2 = int_to_ptr.vmem [resolvable:$false] %s1417_s2 }
  0x49   : > { %s1419_s6 = scalar_lea.vmem %s1418_s2, 256  ;;  %p1420_p13 = scmp.lt.s32.totalorder %s253_s13, %s1418_s2 }
  0x4a   : > { %p1416_p9 = pneg %p1415_p7  ;;  %p1421_p12 = scmp.lt.s32.totalorder %s1419_s6, %s1412_s16 }
  0x4c   : > { %p1422_p0 = por %p1421_p12, %p1420_p13 }
  0x4e   : > { %p1423_p5 = pnand %p1422_p0, %p1416_p9 }
  0x50   : > { %1426 = shalt.err (!%p1423_p5)
}
  0x51   : > { %1251 = dma.hbm_to_vmem [thread:$0]  (!%p1680_p2), %s250_s11, 128, %s253_s13, %s239_s1  }
  0x52   : > { %261 = sbr.rel (%p1611_p8) target bundleno = 768 (0x300), region = 36  ;;  %s1691_s8 = sand.u32 (!%p1611_p8), 1, %s1499_s19  }
  0x53   : > { %s1200_s17 = sshll.u32 (!%p1611_p8), %s1691_s8, 3  ;;  %s264_s24 = scalar_lea.sflag (!%p1611_p8), [#allocation3], %s1691_s8 }
  0x54   : > { %s1697_s2 = scalar_lea.vmem (!%p1611_p8), [#allocation2], %s1200_s17  ;;  %p1801_p10 = scmp.ne.s32.totalorder (!%p1611_p8), %s1792_s28, 0 }
  0x57   : > { %1478 = dma.done.wait (%p1801_p10), %s264_s24, 128  }
  0x58   : > { %1480 = vsyncadd (%p1801_p10), %s264_s24, 4294967168  ;;  %p1802_p11 = scmp.ne.s32.totalorder %s1790_s26, 0 }
  0x5a   : > { %1482 = dma.done.wait (%p1802_p11), [#allocation6], 24768  }
  0x5b   : > { %1484 = vsyncadd (%p1802_p11), [#allocation6], 4294942528 }
  0x5c   : > { %1486 = dma.done.wait (%p1802_p11), [#allocation9], 128  }
  0x5d   : > { %1488 = vsyncadd (%p1802_p11), [#allocation9], 4294967168  ;;  %v355_v0 = vld [vmem:[#allocation7 + $0xf8] sm:$0xff]  ;;  %v354_v2 = vld [vmem:[#allocation7 + $0xf0] sm:$0xff]  ;;  %vm467_vm0 = vcmask 1043456   ;;  %vm463_vm1 = vcmask 31744  }
  0x5e   : > { %v582_v1 = vld [vmem:[#allocation7 + $0x2f8] sm:$0xff]  ;;  %391 = vmatprep.subr.mxu0 %v355_v0  ;;  %v581_v3 = vld [vmem:[#allocation7 + $0x2f0] sm:$0xff]  ;;  %v353_v4 = vld [vmem:[#allocation7 + $0xe8] sm:$0xff]  ;;  %s303_s1 = scalar_lea.vmem [#allocation10], %s1200_s17  ;;  %s1221_s26 = sshll.u32 %s1507_s21, 7 }
  0x5f   : > { %615 = vmatprep.subr.mxu1 %v582_v1  ;;  %v580_v5 = vld [vmem:[#allocation7 + $0x2e8] sm:$0xff]  ;;  %392 = vmatpush1.msra.mxu0 %v354_v2  ;;  %v352_v6 = vld [vmem:[#allocation7 + $0xe0] sm:$0xff]  ;;  %v351_v8 = vld [vmem:[#allocation7 + $0xd8] sm:$0xff]  ;;  %s1042_s28 = sshll.u32 %s303_s1, 4  ;;  %s1040_s9 = scalar_lea.hbm %s1783_s4, %s1221_s26  ;;  %s1043_s28 = int_to_ptr.vmem [resolvable:$true] %s1042_s28 }
  0x60   : > { %616 = vmatpush1.msra.mxu1 %v581_v3  ;;  %v579_v7 = vld [vmem:[#allocation7 + $0x2e0] sm:$0xff]  ;;  %393 = vmatprep.subr.mxu0 %v353_v4  ;;  %v578_v9 = vld [vmem:[#allocation7 + $0x2d8] sm:$0xff]  ;;  %v350_v10 = vld [vmem:[#allocation7 + $0xd0] sm:$0xff]  ;;  %s1019_s11 = scalar_lea.sflag [#allocation4], %s1691_s8  ;;  %s1427_s12 = scalar_lea.vmem %s1043_s28, 128 }
  0x61   : > { %617 = vmatprep.subr.mxu1 %v580_v5  ;;  %v577_v11 = vld [vmem:[#allocation7 + $0x2d0] sm:$0xff]  ;;  %394 = vmatpush1.msra.mxu0 %v352_v6  ;;  %v349_v12 = vld [vmem:[#allocation7 + $0xc8] sm:$0xff]  ;;  %v348_v14 = vld [vmem:[#allocation7 + $0xc0] sm:$0xff]  ;;  %p1428_p8 = scmp.ne.s32.totalorder %s1043_s28, %s1427_s12  ;;  %s1526_s13 = smov [#allocation10]  }
  0x62   : > { %618 = vmatpush1.msra.mxu1 %v579_v7  ;;  %v576_v13 = vld [vmem:[#allocation7 + $0x2c8] sm:$0xff]  ;;  %395 = vmatprep.subr.mxu0 %v351_v8  ;;  %v575_v15 = vld [vmem:[#allocation7 + $0x2c0] sm:$0xff]  ;;  %v347_v16 = vld [vmem:[#allocation7 + $0xb8] sm:$0xff]  ;;  %s1431_s27 = sshll.u32 %s1526_s13, 4  ;;  %s1432_s27 = int_to_ptr.vmem [resolvable:$false] %s1431_s27 }
  0x63   : > { %619 = vmatprep.subr.mxu1 %v578_v9  ;;  %396 = vmatpush1.msra.mxu0 %v350_v10  ;;  %v574_v17 = vld [vmem:[#allocation7 + $0x2b8] sm:$0xff]  ;;  %v346_v18 = vld [vmem:[#allocation7 + $0xb0] sm:$0xff]  ;;  %v345_v20 = vld [vmem:[#allocation7 + $0xa8] sm:$0xff]  ;;  %p1429_p3 = pnand %p1428_p8, %p1663_p6  ;;  %s1433_s16 = scalar_lea.vmem %s1432_s27, 256 }
  0x64   : > { %620 = vmatpush1.msra.mxu1 %v577_v11  ;;  %397 = vmatprep.subr.mxu0 %v349_v12  ;;  %v573_v19 = vld [vmem:[#allocation7 + $0x2b0] sm:$0xff]  ;;  %v572_v21 = vld [vmem:[#allocation7 + $0x2a8] sm:$0xff]  ;;  %v344_v22 = vld [vmem:[#allocation7 + $0xa0] sm:$0xff]  ;;  %p1434_p1 = scmp.lt.s32.totalorder %s1043_s28, %s1432_s27  ;;  %p1435_p4 = scmp.lt.s32.totalorder %s1433_s16, %s1427_s12 }
  0x65   : > { %621 = vmatprep.subr.mxu1 %v576_v13  ;;  %398 = vmatpush1.msra.mxu0 %v348_v14  ;;  %v571_v23 = vld [vmem:[#allocation7 + $0x2a0] sm:$0xff]  ;;  %v343_v24 = vld [vmem:[#allocation7 + $0x98] sm:$0xff]  ;;  %v342_v26 = vld [vmem:[#allocation7 + $0x90] sm:$0xff]  ;;  %p1430_p2 = pneg %p1429_p3 }
  0x66   : > { %622 = vmatpush1.msra.mxu1 %v575_v15  ;;  %399 = vmatprep.subr.mxu0 %v347_v16  ;;  %v570_v25 = vld [vmem:[#allocation7 + $0x298] sm:$0xff]  ;;  %v569_v27 = vld [vmem:[#allocation7 + $0x290] sm:$0xff]  ;;  %v341_v28 = vld [vmem:[#allocation7 + $0x88] sm:$0xff]  ;;  %p1436_p7 = por %p1435_p4, %p1434_p1 }
  0x67   : > { %623 = vmatprep.subr.mxu1 %v574_v17  ;;  %400 = vmatpush1.msra.mxu0 %v346_v18  ;;  %v568_v29 = vld [vmem:[#allocation7 + $0x288] sm:$0xff]  ;;  %v340_v30 = vld [vmem:[#allocation7 + $0x80] sm:$0xff]  ;;  %v339_v32 = vld [vmem:[#allocation7 + $0x78] sm:$0xff] }
  0x68   : > { %624 = vmatpush1.msra.mxu1 %v573_v19  ;;  %401 = vmatprep.subr.mxu0 %v345_v20  ;;  %v567_v31 = vld [vmem:[#allocation7 + $0x280] sm:$0xff]  ;;  %v566_v33 = vld [vmem:[#allocation7 + $0x278] sm:$0xff]  ;;  %v338_v34 = vld [vmem:[#allocation7 + $0x70] sm:$0xff]  ;;  %p1437_p9 = pnand %p1436_p7, %p1430_p2 }
  0x69   : > { %625 = vmatprep.subr.mxu1 %v572_v21  ;;  %402 = vmatpush1.msra.mxu0 %v344_v22  ;;  %v565_v35 = vld [vmem:[#allocation7 + $0x270] sm:$0xff]  ;;  %v337_v36 = vld [vmem:[#allocation7 + $0x68] sm:$0xff]  ;;  %v336_v38 = vld [vmem:[#allocation7 + $0x60] sm:$0xff] }
  0x6a   : > { %626 = vmatpush1.msra.mxu1 %v571_v23  ;;  %403 = vmatprep.subr.mxu0 %v343_v24  ;;  %v564_v37 = vld [vmem:[#allocation7 + $0x268] sm:$0xff]  ;;  %v563_v39 = vld [vmem:[#allocation7 + $0x260] sm:$0xff]  ;;  %v335_v40 = vld [vmem:[#allocation7 + $0x58] sm:$0xff] }
  0x6b   : > { %627 = vmatprep.subr.mxu1 %v570_v25  ;;  %404 = vmatpush1.msra.mxu0 %v342_v26  ;;  %v562_v41 = vld [vmem:[#allocation7 + $0x258] sm:$0xff]  ;;  %v334_v42 = vld [vmem:[#allocation7 + $0x50] sm:$0xff]  ;;  %v333_v44 = vld [vmem:[#allocation7 + $0x48] sm:$0xff] }
  0x6c   : > { %628 = vmatpush1.msra.mxu1 %v569_v27  ;;  %405 = vmatprep.subr.mxu0 %v341_v28  ;;  %v561_v43 = vld [vmem:[#allocation7 + $0x250] sm:$0xff]  ;;  %v560_v45 = vld [vmem:[#allocation7 + $0x248] sm:$0xff]  ;;  %v332_v46 = vld [vmem:[#allocation7 + $0x40] sm:$0xff] }
  0x6d   : > { %629 = vmatprep.subr.mxu1 %v568_v29  ;;  %406 = vmatpush1.msra.mxu0 %v340_v30  ;;  %v559_v47 = vld [vmem:[#allocation7 + $0x240] sm:$0xff]  ;;  %v331_v48 = vld [vmem:[#allocation7 + $0x38] sm:$0xff]  ;;  %v330_v50 = vld [vmem:[#allocation7 + $0x30] sm:$0xff] }
  0x6e   : > { %630 = vmatpush1.msra.mxu1 %v567_v31  ;;  %407 = vmatprep.subr.mxu0 %v339_v32  ;;  %v558_v49 = vld [vmem:[#allocation7 + $0x238] sm:$0xff]  ;;  %v557_v51 = vld [vmem:[#allocation7 + $0x230] sm:$0xff]  ;;  %v329_v52 = vld [vmem:[#allocation7 + $0x28] sm:$0xff] }
  0x6f   : > { %631 = vmatprep.subr.mxu1 %v566_v33  ;;  %408 = vmatpush1.msra.mxu0 %v338_v34  ;;  %v556_v53 = vld [vmem:[#allocation7 + $0x228] sm:$0xff]  ;;  %v328_v54 = vld [vmem:[#allocation7 + $0x20] sm:$0xff]  ;;  %v327_v56 = vld [vmem:[#allocation7 + $0x18] sm:$0xff] }
  0x70   : > { %632 = vmatpush1.msra.mxu1 %v565_v35  ;;  %409 = vmatprep.subr.mxu0 %v337_v36  ;;  %v555_v55 = vld [vmem:[#allocation7 + $0x220] sm:$0xff]  ;;  %v554_v57 = vld [vmem:[#allocation7 + $0x218] sm:$0xff]  ;;  %v326_v58 = vld [vmem:[#allocation7 + $0x10] sm:$0xff] }
  0x71   : > { %633 = vmatprep.subr.mxu1 %v564_v37  ;;  %410 = vmatpush1.msra.mxu0 %v336_v38  ;;  %v553_v59 = vld [vmem:[#allocation7 + $0x210] sm:$0xff]  ;;  %v325_v60 = vld [vmem:[#allocation7 + $0x8] sm:$0xff]  ;;  %v324_v62 = vld [vmem:[#allocation7] sm:$0xff] }
  0x72   : > { %634 = vmatpush1.msra.mxu1 %v563_v39  ;;  %411 = vmatprep.subr.mxu0 %v335_v40  ;;  %v552_v61 = vld [vmem:[#allocation7 + $0x208] sm:$0xff]  ;;  %v551_v63 = vld [vmem:[#allocation7 + $0x200] sm:$0xff]  ;;  %v387_v0 = vld [vmem:[#allocation7 + $0x1f8] sm:$0xff] }
  0x73   : > { %635 = vmatprep.subr.mxu1 %v562_v41  ;;  %412 = vmatpush1.msra.mxu0 %v334_v42  ;;  %v614_v1 = vld [vmem:[#allocation7 + $0x3f8] sm:$0xff]  ;;  %v386_v2 = vld [vmem:[#allocation7 + $0x1f0] sm:$0xff]  ;;  %v385_v4 = vld [vmem:[#allocation7 + $0x1e8] sm:$0xff] }
  0x74   : > { %636 = vmatpush1.msra.mxu1 %v561_v43  ;;  %413 = vmatprep.subr.mxu0 %v333_v44  ;;  %v613_v3 = vld [vmem:[#allocation7 + $0x3f0] sm:$0xff]  ;;  %v612_v5 = vld [vmem:[#allocation7 + $0x3e8] sm:$0xff]  ;;  %v384_v6 = vld [vmem:[#allocation7 + $0x1e0] sm:$0xff] }
  0x75   : > { %637 = vmatprep.subr.mxu1 %v560_v45  ;;  %414 = vmatpush1.msra.mxu0 %v332_v46  ;;  %v611_v7 = vld [vmem:[#allocation7 + $0x3e0] sm:$0xff]  ;;  %v383_v8 = vld [vmem:[#allocation7 + $0x1d8] sm:$0xff]  ;;  %v382_v10 = vld [vmem:[#allocation7 + $0x1d0] sm:$0xff] }
  0x76   : > { %638 = vmatpush1.msra.mxu1 %v559_v47  ;;  %415 = vmatprep.subr.mxu0 %v331_v48  ;;  %v610_v9 = vld [vmem:[#allocation7 + $0x3d8] sm:$0xff]  ;;  %v609_v11 = vld [vmem:[#allocation7 + $0x3d0] sm:$0xff]  ;;  %v381_v12 = vld [vmem:[#allocation7 + $0x1c8] sm:$0xff] }
  0x77   : > { %639 = vmatprep.subr.mxu1 %v558_v49  ;;  %416 = vmatpush1.msra.mxu0 %v330_v50  ;;  %v608_v13 = vld [vmem:[#allocation7 + $0x3c8] sm:$0xff]  ;;  %v380_v14 = vld [vmem:[#allocation7 + $0x1c0] sm:$0xff]  ;;  %v379_v16 = vld [vmem:[#allocation7 + $0x1b8] sm:$0xff] }
  0x78   : > { %640 = vmatpush1.msra.mxu1 %v557_v51  ;;  %417 = vmatprep.subr.mxu0 %v329_v52  ;;  %v607_v15 = vld [vmem:[#allocation7 + $0x3c0] sm:$0xff]  ;;  %v606_v17 = vld [vmem:[#allocation7 + $0x3b8] sm:$0xff]  ;;  %v378_v18 = vld [vmem:[#allocation7 + $0x1b0] sm:$0xff] }
  0x79   : > { %641 = vmatprep.subr.mxu1 %v556_v53  ;;  %418 = vmatpush1.msra.mxu0 %v328_v54  ;;  %v605_v19 = vld [vmem:[#allocation7 + $0x3b0] sm:$0xff]  ;;  %v377_v20 = vld [vmem:[#allocation7 + $0x1a8] sm:$0xff]  ;;  %v376_v22 = vld [vmem:[#allocation7 + $0x1a0] sm:$0xff] }
  0x7a   : > { %642 = vmatpush1.msra.mxu1 %v555_v55  ;;  %419 = vmatprep.subr.mxu0 %v327_v56  ;;  %v604_v21 = vld [vmem:[#allocation7 + $0x3a8] sm:$0xff]  ;;  %v603_v23 = vld [vmem:[#allocation7 + $0x3a0] sm:$0xff]  ;;  %v375_v24 = vld [vmem:[#allocation7 + $0x198] sm:$0xff] }
  0x7b   : > { %643 = vmatprep.subr.mxu1 %v554_v57  ;;  %420 = vmatpush1.msra.mxu0 %v326_v58  ;;  %v602_v25 = vld [vmem:[#allocation7 + $0x398] sm:$0xff]  ;;  %v374_v26 = vld [vmem:[#allocation7 + $0x190] sm:$0xff]  ;;  %v373_v28 = vld [vmem:[#allocation7 + $0x188] sm:$0xff] }
  0x7c   : > { %644 = vmatpush1.msra.mxu1 %v553_v59  ;;  %421 = vmatprep.subr.mxu0 %v325_v60  ;;  %v601_v27 = vld [vmem:[#allocation7 + $0x390] sm:$0xff]  ;;  %v600_v29 = vld [vmem:[#allocation7 + $0x388] sm:$0xff]  ;;  %v372_v30 = vld [vmem:[#allocation7 + $0x180] sm:$0xff] }
  0x7d   : > { %645 = vmatprep.subr.mxu1 %v552_v61  ;;  %422 = vmatpush1.msra.mxu0 %v324_v62  ;;  %v599_v31 = vld [vmem:[#allocation7 + $0x380] sm:$0xff]  ;;  %v371_v32 = vld [vmem:[#allocation7 + $0x178] sm:$0xff]  ;;  %v370_v34 = vld [vmem:[#allocation7 + $0x170] sm:$0xff] }
  0x7e   : > { %646 = vmatpush1.msra.mxu1 %v551_v63  ;;  %423 = vmatprep.subr.mxu0 %v387_v0  ;;  %v598_v33 = vld [vmem:[#allocation7 + $0x378] sm:$0xff]  ;;  %v597_v35 = vld [vmem:[#allocation7 + $0x370] sm:$0xff]  ;;  %v369_v36 = vld [vmem:[#allocation7 + $0x168] sm:$0xff] }
  0x7f   : > { %647 = vmatprep.subr.mxu1 %v614_v1  ;;  %424 = vmatpush2.msra.mxu0 %v386_v2  ;;  %v596_v37 = vld [vmem:[#allocation7 + $0x368] sm:$0xff]  ;;  %v368_v38 = vld [vmem:[#allocation7 + $0x160] sm:$0xff]  ;;  %v367_v40 = vld [vmem:[#allocation7 + $0x158] sm:$0xff] }
  0x80   : > { %648 = vmatpush2.msra.mxu1 %v613_v3  ;;  %425 = vmatprep.subr.mxu0 %v385_v4  ;;  %v595_v39 = vld [vmem:[#allocation7 + $0x360] sm:$0xff]  ;;  %v594_v41 = vld [vmem:[#allocation7 + $0x358] sm:$0xff]  ;;  %v366_v42 = vld [vmem:[#allocation7 + $0x150] sm:$0xff] }
  0x81   : > { %649 = vmatprep.subr.mxu1 %v612_v5  ;;  %426 = vmatpush2.msra.mxu0 %v384_v6  ;;  %v593_v43 = vld [vmem:[#allocation7 + $0x350] sm:$0xff]  ;;  %v365_v44 = vld [vmem:[#allocation7 + $0x148] sm:$0xff]  ;;  %v364_v46 = vld [vmem:[#allocation7 + $0x140] sm:$0xff] }
  0x82   : > { %650 = vmatpush2.msra.mxu1 %v611_v7  ;;  %427 = vmatprep.subr.mxu0 %v383_v8  ;;  %v592_v45 = vld [vmem:[#allocation7 + $0x348] sm:$0xff]  ;;  %v591_v47 = vld [vmem:[#allocation7 + $0x340] sm:$0xff]  ;;  %v363_v48 = vld [vmem:[#allocation7 + $0x138] sm:$0xff] }
  0x83   : > { %651 = vmatprep.subr.mxu1 %v610_v9  ;;  %428 = vmatpush2.msra.mxu0 %v382_v10  ;;  %v590_v49 = vld [vmem:[#allocation7 + $0x338] sm:$0xff]  ;;  %v362_v50 = vld [vmem:[#allocation7 + $0x130] sm:$0xff]  ;;  %v361_v52 = vld [vmem:[#allocation7 + $0x128] sm:$0xff] }
  0x84   : > { %652 = vmatpush2.msra.mxu1 %v609_v11  ;;  %429 = vmatprep.subr.mxu0 %v381_v12  ;;  %v589_v51 = vld [vmem:[#allocation7 + $0x330] sm:$0xff]  ;;  %v588_v53 = vld [vmem:[#allocation7 + $0x328] sm:$0xff]  ;;  %v360_v54 = vld [vmem:[#allocation7 + $0x120] sm:$0xff] }
  0x85   : > { %653 = vmatprep.subr.mxu1 %v608_v13  ;;  %430 = vmatpush2.msra.mxu0 %v380_v14  ;;  %v587_v55 = vld [vmem:[#allocation7 + $0x320] sm:$0xff]  ;;  %v359_v57 = vld [vmem:[#allocation7 + $0x118] sm:$0xff]  ;;  %v358_v59 = vld [vmem:[#allocation7 + $0x110] sm:$0xff] }
  0x86   : > { %654 = vmatpush2.msra.mxu1 %v607_v15  ;;  %431 = vmatprep.subr.mxu0 %v379_v16  ;;  %v1712_v56 = vld [vmem:[%s1697_s2] sm:$0xff]  ;;  %v586_v58 = vld [vmem:[#allocation7 + $0x318] sm:$0xff] }
  0x87   : > { %655 = vmatprep.subr.mxu1 %v606_v17  ;;  %432 = vmatpush2.msra.mxu0 %v378_v18  ;;  %v585_v60 = vld [vmem:[#allocation7 + $0x310] sm:$0xff]  ;;  %v357_v61 = vld [vmem:[#allocation7 + $0x108] sm:$0xff]  ;;  %v389_v63 = vcombine.high %v1712_v56, %v1712_v56  ;;  %v356_v0 = vld [vmem:[#allocation7 + $0x100] sm:$0xff] }
  0x88   : > { %656 = vmatpush2.msra.mxu1 %v605_v19  ;;  %433 = vmatprep.subr.mxu0 %v377_v20  ;;  %v584_v62 = vld [vmem:[#allocation7 + $0x308] sm:$0xff]  ;;  %v583_v1 = vld [vmem:[#allocation7 + $0x300] sm:$0xff]  ;;  %v805_v2 = vld [vmem:[#allocation7 + $0x4f8] sm:$0xff] }
  0x89   : > { %657 = vmatprep.subr.mxu1 %v604_v21  ;;  %434 = vmatpush2.msra.mxu0 %v376_v22  ;;  %v804_v3 = vld [vmem:[#allocation7 + $0x4f0] sm:$0xff]  ;;  %v803_v4 = vld [vmem:[#allocation7 + $0x4e8] sm:$0xff]  ;;  %v802_v5 = vld [vmem:[#allocation7 + $0x4e0] sm:$0xff] }
  0x8a   : > { %658 = vmatpush2.msra.mxu1 %v603_v23  ;;  %435 = vmatprep.subr.mxu0 %v375_v24  ;;  %v801_v6 = vld [vmem:[#allocation7 + $0x4d8] sm:$0xff]  ;;  %v800_v7 = vld [vmem:[#allocation7 + $0x4d0] sm:$0xff]  ;;  %v799_v8 = vld [vmem:[#allocation7 + $0x4c8] sm:$0xff] }
  0x8b   : > { %659 = vmatprep.subr.mxu1 %v602_v25  ;;  %436 = vmatpush2.msra.mxu0 %v374_v26  ;;  %v798_v9 = vld [vmem:[#allocation7 + $0x4c0] sm:$0xff]  ;;  %v797_v10 = vld [vmem:[#allocation7 + $0x4b8] sm:$0xff]  ;;  %v796_v11 = vld [vmem:[#allocation7 + $0x4b0] sm:$0xff] }
  0x8c   : > { %660 = vmatpush2.msra.mxu1 %v601_v27  ;;  %437 = vmatprep.subr.mxu0 %v373_v28  ;;  %v795_v12 = vld [vmem:[#allocation7 + $0x4a8] sm:$0xff]  ;;  %v794_v13 = vld [vmem:[#allocation7 + $0x4a0] sm:$0xff]  ;;  %v793_v14 = vld [vmem:[#allocation7 + $0x498] sm:$0xff] }
  0x8d   : > { %661 = vmatprep.subr.mxu1 %v600_v29  ;;  %438 = vmatpush2.msra.mxu0 %v372_v30  ;;  %v792_v15 = vld [vmem:[#allocation7 + $0x490] sm:$0xff]  ;;  %v791_v16 = vld [vmem:[#allocation7 + $0x488] sm:$0xff]  ;;  %v790_v17 = vld [vmem:[#allocation7 + $0x480] sm:$0xff] }
  0x8e   : > { %662 = vmatpush2.msra.mxu1 %v599_v31  ;;  %439 = vmatprep.subr.mxu0 %v371_v32  ;;  %v789_v18 = vld [vmem:[#allocation7 + $0x478] sm:$0xff]  ;;  %v788_v19 = vld [vmem:[#allocation7 + $0x470] sm:$0xff]  ;;  %v787_v20 = vld [vmem:[#allocation7 + $0x468] sm:$0xff] }
  0x8f   : > { %663 = vmatprep.subr.mxu1 %v598_v33  ;;  %440 = vmatpush2.msra.mxu0 %v370_v34  ;;  %v786_v21 = vld [vmem:[#allocation7 + $0x460] sm:$0xff]  ;;  %v785_v22 = vld [vmem:[#allocation7 + $0x458] sm:$0xff]  ;;  %v784_v23 = vld [vmem:[#allocation7 + $0x450] sm:$0xff] }
  0x90   : > { %664 = vmatpush2.msra.mxu1 %v597_v35  ;;  %441 = vmatprep.subr.mxu0 %v369_v36  ;;  %v783_v24 = vld [vmem:[#allocation7 + $0x448] sm:$0xff]  ;;  %v782_v25 = vld [vmem:[#allocation7 + $0x440] sm:$0xff]  ;;  %v781_v26 = vld [vmem:[#allocation7 + $0x438] sm:$0xff] }
  0x91   : > { %665 = vmatprep.subr.mxu1 %v596_v37  ;;  %442 = vmatpush2.msra.mxu0 %v368_v38  ;;  %v780_v27 = vld [vmem:[#allocation7 + $0x430] sm:$0xff]  ;;  %v779_v28 = vld [vmem:[#allocation7 + $0x428] sm:$0xff]  ;;  %v778_v29 = vld [vmem:[#allocation7 + $0x420] sm:$0xff] }
  0x92   : > { %666 = vmatpush2.msra.mxu1 %v595_v39  ;;  %443 = vmatprep.subr.mxu0 %v367_v40  ;;  %v777_v30 = vld [vmem:[#allocation7 + $0x418] sm:$0xff]  ;;  %v776_v31 = vld [vmem:[#allocation7 + $0x410] sm:$0xff]  ;;  %v775_v32 = vld [vmem:[#allocation7 + $0x408] sm:$0xff] }
  0x93   : > { %667 = vmatprep.subr.mxu1 %v594_v41  ;;  %444 = vmatpush2.msra.mxu0 %v366_v42  ;;  %v774_v33 = vld [vmem:[#allocation7 + $0x400] sm:$0xff]  ;;  %v837_v34 = vld [vmem:[#allocation7 + $0x5f8] sm:$0xff]  ;;  %v836_v35 = vld [vmem:[#allocation7 + $0x5f0] sm:$0xff] }
  0x94   : > { %668 = vmatpush2.msra.mxu1 %v593_v43  ;;  %445 = vmatprep.subr.mxu0 %v365_v44  ;;  %v835_v36 = vld [vmem:[#allocation7 + $0x5e8] sm:$0xff]  ;;  %v834_v37 = vld [vmem:[#allocation7 + $0x5e0] sm:$0xff]  ;;  %v833_v38 = vld [vmem:[#allocation7 + $0x5d8] sm:$0xff] }
  0x95   : > { %669 = vmatprep.subr.mxu1 %v592_v45  ;;  %446 = vmatpush2.msra.mxu0 %v364_v46  ;;  %v832_v39 = vld [vmem:[#allocation7 + $0x5d0] sm:$0xff]  ;;  %v831_v40 = vld [vmem:[#allocation7 + $0x5c8] sm:$0xff]  ;;  %v830_v41 = vld [vmem:[#allocation7 + $0x5c0] sm:$0xff] }
  0x96   : > { %670 = vmatpush2.msra.mxu1 %v591_v47  ;;  %447 = vmatprep.subr.mxu0 %v363_v48  ;;  %v829_v42 = vld [vmem:[#allocation7 + $0x5b8] sm:$0xff]  ;;  %v828_v43 = vld [vmem:[#allocation7 + $0x5b0] sm:$0xff]  ;;  %v827_v44 = vld [vmem:[#allocation7 + $0x5a8] sm:$0xff] }
  0x97   : > { %671 = vmatprep.subr.mxu1 %v590_v49  ;;  %448 = vmatpush2.msra.mxu0 %v362_v50  ;;  %v826_v45 = vld [vmem:[#allocation7 + $0x5a0] sm:$0xff]  ;;  %v825_v46 = vld [vmem:[#allocation7 + $0x598] sm:$0xff]  ;;  %v824_v47 = vld [vmem:[#allocation7 + $0x590] sm:$0xff] }
  0x98   : > { %672 = vmatpush2.msra.mxu1 %v589_v51  ;;  %449 = vmatprep.subr.mxu0 %v361_v52  ;;  %v823_v48 = vld [vmem:[#allocation7 + $0x588] sm:$0xff]  ;;  %v822_v49 = vld [vmem:[#allocation7 + $0x580] sm:$0xff]  ;;  %v821_v50 = vld [vmem:[#allocation7 + $0x578] sm:$0xff] }
  0x99   : > { %673 = vmatprep.subr.mxu1 %v588_v53  ;;  %450 = vmatpush2.msra.mxu0 %v360_v54  ;;  %v820_v51 = vld [vmem:[#allocation7 + $0x570] sm:$0xff]  ;;  %v819_v52 = vld [vmem:[#allocation7 + $0x568] sm:$0xff]  ;;  %v818_v53 = vld [vmem:[#allocation7 + $0x560] sm:$0xff] }
  0x9a   : > { %674 = vmatpush2.msra.mxu1 %v587_v55  ;;  %451 = vmatprep.subr.mxu0 %v359_v57  ;;  %v817_v54 = vld [vmem:[#allocation7 + $0x558] sm:$0xff]  ;;  %v816_v55 = vld [vmem:[#allocation7 + $0x550] sm:$0xff]  ;;  %v815_v57 = vld [vmem:[#allocation7 + $0x548] sm:$0xff] }
  0x9b   : > { %675 = vmatprep.subr.mxu1 %v586_v58  ;;  %452 = vmatpush2.msra.mxu0 %v358_v59  ;;  %v814_v58 = vld [vmem:[#allocation7 + $0x540] sm:$0xff]  ;;  %v813_v59 = vld [vmem:[#allocation7 + $0x538] sm:$0xff] }
  0x9c   : > { %676 = vmatpush2.msra.mxu1 %v585_v60  ;;  %453 = vmatprep.subr.mxu0 %v357_v61  ;;  %v812_v60 = vld [vmem:[#allocation7 + $0x530] sm:$0xff]  ;;  %v811_v61 = vld [vmem:[#allocation7 + $0x528] sm:$0xff] }
  0x9d   : > { %677 = vmatprep.subr.mxu1 %v584_v62  ;;  %454 = vmatpush2.msra.mxu0 %v356_v0  ;;  %v810_v62 = vld [vmem:[#allocation7 + $0x520] sm:$0xff]  ;;  %v808_v0 = vld [vmem:[#allocation7 + $0x510] sm:$0xff] }
  0x9e   : > { %455 = vmatprep.mubr.f32.mxu0 %v389_v63  ;;  %678 = vmatpush2.msra.mxu1 %v583_v1  ;;  %v807_v1 = vld [vmem:[#allocation7 + $0x508] sm:$0xff] }
  0x9f   : > { %679 = vmatprep.mubr.f32.mxu1 %v389_v63  ;;  %456 = vmatmul.mubr.f32.vlgmr.msra.gmra.mxu0 %v1712_v56 }
  0xa0   : > { %680 = vmatmul.mubr.f32.vlgmr.msra.gmra.mxu1 %v1712_v56  ;;  %838 = vmatprep.subr.mxu1 %v805_v2  ;;  %v806_v2 = vld [vmem:[#allocation7 + $0x500] sm:$0xff] }
  0xa1   : > { %902 = vmatprep.mubr.f32.mxu1 %v389_v63  ;;  %839 = vmatpush1.msra.mxu1 %v804_v3  ;;  %v809_v63 = vld [vmem:[#allocation7 + $0x518] sm:$0xff]  ;;  %v1525_v3 = vmov 0.0  }
  0xa2   : > { %840 = vmatprep.subr.mxu1 %v803_v4  ;;  %538 = vmatprep.mubr.f32.mxu0 %v1525_v3 }
  0xa3   : > { %841 = vmatpush1.msra.mxu1 %v802_v5 }
  0xa4   : > { %842 = vmatprep.subr.mxu1 %v801_v6 }
  0xa5   : > { %843 = vmatpush1.msra.mxu1 %v800_v7  ;;  %v462_v7 = vld [vmem:[#allocation5] sm:$0xf] }
  0xa6   : > { %844 = vmatprep.subr.mxu1 %v799_v8 }
  0xa7   : > { %845 = vmatpush1.msra.mxu1 %v798_v9 }
  0xa8   : > { %846 = vmatprep.subr.mxu1 %v797_v10 }
  0xa9   : > { %847 = vmatpush1.msra.mxu1 %v796_v11  ;;  %v910_v11 = vld [vmem:[#allocation5 + $0x8] sm:$0xf] }
  0xaa   : > { %848 = vmatprep.subr.mxu1 %v795_v12 }
  0xab   : > { %849 = vmatpush1.msra.mxu1 %v794_v13 }
  0xac   : > { %850 = vmatprep.subr.mxu1 %v793_v14 }
  0xad   : > { %851 = vmatpush1.msra.mxu1 %v792_v15 }
  0xae   : > { %852 = vmatprep.subr.mxu1 %v791_v16  ;;  %v322_v16 = vld [vmem:[#allocation8] sm:$0xff] }
  0xaf   : > { %853 = vmatpush1.msra.mxu1 %v790_v17 }
  0xb0   : > { %854 = vmatprep.subr.mxu1 %v789_v18 }
  0xb1   : > { %855 = vmatpush1.msra.mxu1 %v788_v19 }
  0xb2   : > { %856 = vmatprep.subr.mxu1 %v787_v20 }
  0xb3   : > { %857 = vmatpush1.msra.mxu1 %v786_v21 }
  0xb4   : > { %858 = vmatprep.subr.mxu1 %v785_v22 }
  0xb5   : > { %859 = vmatpush1.msra.mxu1 %v784_v23 }
  0xb6   : > { %860 = vmatprep.subr.mxu1 %v783_v24 }
  0xb7   : > { %861 = vmatpush1.msra.mxu1 %v782_v25 }
  0xb8   : > { %862 = vmatprep.subr.mxu1 %v781_v26 }
  0xb9   : > { %863 = vmatpush1.msra.mxu1 %v780_v27 }
  0xba   : > { %864 = vmatprep.subr.mxu1 %v779_v28 }
  0xbb   : > { %865 = vmatpush1.msra.mxu1 %v778_v29 }
  0xbc   : > { %866 = vmatprep.subr.mxu1 %v777_v30 }
  0xbd   : > { %867 = vmatpush1.msra.mxu1 %v776_v31 }
  0xbe   : > { %868 = vmatprep.subr.mxu1 %v775_v32 }
  0xbf   : > { %869 = vmatpush1.msra.mxu1 %v774_v33 }
  0xc0   : > { %870 = vmatprep.subr.mxu1 %v837_v34 }
  0xc1   : > { %871 = vmatpush2.msra.mxu1 %v836_v35 }
  0xc2   : > { %872 = vmatprep.subr.mxu1 %v835_v36 }
  0xc3   : > { %873 = vmatpush2.msra.mxu1 %v834_v37 }
  0xc4   : > { %874 = vmatprep.subr.mxu1 %v833_v38 }
  0xc5   : > { %875 = vmatpush2.msra.mxu1 %v832_v39 }
  0xc6   : > { %876 = vmatprep.subr.mxu1 %v831_v40 }
  0xc7   : > { %877 = vmatpush2.msra.mxu1 %v830_v41 }
  0xc8   : > { %878 = vmatprep.subr.mxu1 %v829_v42 }
  0xc9   : > { %879 = vmatpush2.msra.mxu1 %v828_v43 }
  0xca   : > { %880 = vmatprep.subr.mxu1 %v827_v44 }
  0xcb   : > { %881 = vmatpush2.msra.mxu1 %v826_v45 }
  0xcc   : > { %882 = vmatprep.subr.mxu1 %v825_v46 }
  0xcd   : > { %883 = vmatpush2.msra.mxu1 %v824_v47 }
  0xce   : > { %884 = vmatprep.subr.mxu1 %v823_v48 }
  0xcf   : > { %885 = vmatpush2.msra.mxu1 %v822_v49 }
  0xd0   : > { %886 = vmatprep.subr.mxu1 %v821_v50 }
  0xd1   : > { %887 = vmatpush2.msra.mxu1 %v820_v51 }
  0xd2   : > { %888 = vmatprep.subr.mxu1 %v819_v52 }
  0xd3   : > { %889 = vmatpush2.msra.mxu1 %v818_v53 }
  0xd4   : > { %890 = vmatprep.subr.mxu1 %v817_v54 }
  0xd5   : > { %891 = vmatpush2.msra.mxu1 %v816_v55 }
  0xd6   : > { %892 = vmatprep.subr.mxu1 %v815_v57 }
  0xd7   : > { %893 = vmatpush2.msra.mxu1 %v814_v58 }
  0xd8   : > { %894 = vmatprep.subr.mxu1 %v813_v59 }
  0xd9   : > { %895 = vmatpush2.msra.mxu1 %v812_v60 }
  0xda   : > { %896 = vmatprep.subr.mxu1 %v811_v61 }
  0xdb   : > { %897 = vmatpush2.msra.mxu1 %v810_v62 }
  0xdc   : > { %898 = vmatprep.subr.mxu1 %v809_v63 }
  0xdd   : > { %899 = vmatpush2.msra.mxu1 %v808_v0 }
  0xde   : > { %900 = vmatprep.subr.mxu1 %v807_v1 }
  0xdf   : > { %901 = vmatpush2.msra.mxu1 %v806_v2 }
  0xe0   : > { %903 = vmatmul.mubr.f32.vlgmr.msra.gmra.mxu1 %v1712_v56  ;;  %v687_v56 = vld [vmem:[#allocation5 + $0x4] sm:$0xf] }
 0x15f   : > { %v457_v4 = vpop.f32.mrf.mxu0 }
 0x160   : > { %v681_v5 = vpop.f32.mrf.mxu1 }
 0x161   : > { %v459_v6 = vpop.f32.mrf.mxu0 }
 0x162   : > { %1206 = vmatprep.subr.msk.mxu0 %vm467_vm0, %v459_v6  ;;  %v683_v8 = vpop.f32.mrf.mxu1 }
 0x163   : > { %1207 = vmatpush1.msk.msra.mxu0 %vm467_vm0, %v457_v4 }
 0x164   : > { %1209 = vmatprep.subr.msk.mxu0 %vm467_vm0, %v683_v8  ;;  %1208 = vmatmul.mubr.msk.f32.vlgmr.msra.gmra.mxu0 %vm463_vm1, %v462_v7 }
 0x165   : > { %1210 = vmatpush1.msk.msra.mxu0 %vm467_vm0, %v681_v5  ;;  %761 = vmatprep.mubr.f32.mxu0 %v1525_v3 }
 0x168   : > { %1211 = vmatmul.mubr.msk.f32.vlgmr.msra.gmra.mxu0 %vm463_vm1, %v687_v56 }
 0x169   : > { %984 = vmatprep.mubr.f32.mxu0 %v1525_v3 }
 0x1a0   : > { %v904_v9 = vpop.f32.mrf.mxu1 }
 0x1a2   : > { %v906_v10 = vpop.f32.mrf.mxu1 }
 0x1a3   : > { %1212 = vmatprep.subr.msk.mxu0 %vm467_vm0, %v906_v10 }
 0x1a4   : > { %1213 = vmatpush1.msk.msra.mxu0 %vm467_vm0, %v904_v9 }
 0x1a5   : > { %1214 = vmatmul.mubr.msk.f32.vlgmr.msra.gmra.mxu0 %vm463_vm1, %v910_v11 }
 0x224   : > { %v540_v12 = vpop.f32.mrf.mxu0 }
 0x226   : > { %v542_v13 = vpop.f32.mrf.mxu0 }
 0x227   : > { %v547_v15 = vcombine.low %v540_v12, %v542_v13 }
 0x228   : > { %v763_v14 = vpop.f32.mrf.mxu0 }
 0x229   : > { %v549_v18 = vadd.f32 %v547_v15, %v322_v16 }
 0x22a   : > { %v765_v17 = vpop.f32.mrf.mxu0 }
 0x22b   : > { %v770_v19 = vcombine.low %v763_v14, %v765_v17 }
 0x22d   : > { %v772_v22 = vadd.f32 %v770_v19, %v549_v18 }
 0x265   : > { %v986_v20 = vpop.f32.mrf.mxu0 }
 0x267   : > { %v988_v21 = vpop.f32.mrf.mxu0 }
 0x268   : > { %v993_v23 = vcombine.low %v986_v20, %v988_v21 }
 0x26a   : > { %v995_v24 = vadd.f32 %v993_v23, %v772_v22 }
 0x26c   : > { %v998_v25 = vcombine.high %v995_v24, %v995_v24  ;;  %v1007_v26 = vmul.f32 %v995_v24, %v995_v24  ;;  %996 = vst [vmem:[%s303_s1] sm:$0xff] %v995_v24  ;;  %v1000_v27 = vsel %vm467_vm0, %v995_v24, 0.0 }
 0x26e   : > { %v1001_v28 = vsel %vm467_vm0, %v998_v25, 0.0  ;;  %v1009_v29 = vcombine.high %v1007_v26, %v1007_v26  ;;  %v1011_v32 = vsel %vm467_vm0, %v1007_v26, 0.0 }
 0x26f   : > { %v1002_v30 = vadd.f32 %v1001_v28, %v1000_v27 }
 0x270   : > { %v1012_v31 = vsel %vm467_vm0, %v1009_v29, 0.0 }
 0x271   : > { %1003 = vadd.xlane.f32.xlu0 %v1002_v30  ;;  %v1013_v33 = vadd.f32 %v1012_v31, %v1011_v32 }
 0x275   : > { %1014 = vadd.xlane.f32.xlu0 %v1013_v33 }
 0x276   : > { %1440 = shalt.err (!%p1437_p9)
}
 0x277   : > { %s1441_s14 = scalar_lea.hbm %s1040_s9, 128  ;;  %s1445_s17 = scalar_lea.hbm %s1783_s4, 256 }
 0x278   : > { %p1442_p13 = scmp.ne.s32.totalorder %s1040_s9, %s1441_s14  ;;  %p1446_p5 = scmp.lt.s32.totalorder %s1040_s9, %s1783_s4 }
 0x279   : > { %p1447_p10 = scmp.lt.s32.totalorder %s1445_s17, %s1441_s14 }
 0x27a   : > { %p1443_p12 = pnand %p1442_p13, %p1663_p6 }
 0x27b   : > { %p1448_p11 = por %p1447_p10, %p1446_p5 }
 0x27c   : > { %p1444_p0 = pneg %p1443_p12 }
 0x27e   : > { %p1449_p8 = pnand %p1448_p11, %p1444_p0 }
 0x280   : > { %1452 = shalt.err (!%p1449_p8)
}
 0x281   : > { %1236 = dma.vmem_to_hbm [thread:$0]  (%p1663_p6), %s1043_s28, 128, %s1040_s9, %s1019_s11   ;;  %vm1005_vm2 = vcmask 3072   ;;  %vm1016_vm3 = vcmask 11272  }
 0x282   : > { %p315_p3 = scmp.lt.s32.totalorder %s1507_s21, 1 }
 0x284   : > { %s1813_s21 = smov (!%p315_p3, %s1507_s21), 1 }
 0x285   : > { %s1205_s1 = sshll.u32 %s1813_s21, 2 }
 0x286   : > { %s321_s7 = scalar_lea.vmem %s1784_s5, %s1205_s1 }
 0x2fa   : > { %v1004_v34 = vpop.xlane.xlu0 %1003 }
 0x2fb   : > { %1006 = vst.msk [vmem:[%s321_s7] sm:$0xf] %vm1005_vm2, %v1004_v34 }
 0x2fe   : > { %v1015_v35 = vpop.xlane.xlu0 %1014 }
 0x2ff   : > { %1017 = vst.msk [vmem:[%s321_s7] sm:$0xf] %vm1016_vm3, %v1015_v35 }
 0x300 PF: > { %s1057_s15 = sand.u32 1, %s1495_s18   ;;  %p1803_p2 = scmp.ne.s32.totalorder %s1793_s29, 0 }
 0x301   : > { %p1804_p6 = scmp.ge.s32.totalorder %s1515_s23, 2  ;;  %s1058_s21 = scalar_lea.sflag [#allocation4], %s1057_s15 }
 0x303   : > { %p1253_p1 = pnand %p1804_p6, %p1803_p2 }
 0x305   : > { %p1254_p4 = pneg %p1253_p1 }
 0x307   : > { %1490 = dma.done.wait (%p1254_p4), %s1058_s21, 128  }
 0x308   : > { %1492 = vsyncadd (%p1254_p4), %s1058_s21, 4294967168  ;;  %s24_s23 = sadd.s32 1, %s1515_s23   ;;  %s1805_s18 = smov %s1499_s19 }
 0x309   : > { %p21_p7 = scmp.ge.s32.totalorder %s24_s23, 4   ;;  %s1806_s19 = smov %s1503_s20 }
 0x30a   : > { %s1807_s20 = smov %s1672_s25  ;;  %s1808_s21 = smov %s1511_s22 }
 0x30b   : > { %s1809_s22 = smov %s1811_s10  ;;  %23 = sbr.rel (!%p21_p7) target bundleno = 11 (0xb), region = 109 }
 0x310   :  { %1073 = vsyncpa [#allocation3], 1 }
 0x311   :  { %1075 = vsyncpa [#allocation3 + $0x1], 1 }
 0x312   :  { %1076 = vsyncpa [#allocation6], 1 }
 0x313   :  { %1077 = vsyncpa [#allocation9], 1 }
 0x314   :  { %1078 = vsyncpa [#allocation4], 1 }
 0x315   :  { %1080 = vsyncpa [#allocation4 + $0x1], 1 }

</bundles_post_ra>
